<compile_context>
chip_gen: v5e
topology: v5e:2x2
jax: 0.10.0
libtpu: 0.0.40
codegen_flags: <defaults>
</compile_context>

<pallas_src>
import functools
import math

import jax
import jax.numpy as jnp
from jax.experimental import pallas as pl
from jax.experimental.pallas import tpu as pltpu


# --------------------------------------------------------------------------
# Pass 1: GroupNorm statistics -> per-channel scale/shift (channels-first)
# --------------------------------------------------------------------------
def _gn_stats_kernel(x_ref, scat_ref, scat_t_ref, gamma_ref, beta_ref,
                     scale_ref, shift_ref, sum_sc, sumsq_sc,
                     *, inv_count, eps):
    s_idx = pl.program_id(1)

    @pl.when(s_idx == 0)
    def _init():
        sum_sc[...] = jnp.zeros_like(sum_sc)
        sumsq_sc[...] = jnp.zeros_like(sumsq_sc)

    x = x_ref[...]                                            # (C, ts) f32
    sum_sc[...] += jnp.sum(x, axis=1, keepdims=True)
    sumsq_sc[...] += jnp.sum(x * x, axis=1, keepdims=True)

    @pl.when(s_idx == pl.num_programs(1) - 1)
    def _finalize():
        # Per-group stats via two thin matmuls: (G,C)@(C,1) gather, then
        # (C,G)@(G,1) broadcast back to channels.  Runs once per batch element.
        # NOTE: E[x^2] - mean^2 in f32; clamped at 0 to guard cancellation.
        gsum = jnp.dot(scat_ref[...], sum_sc[...],
                       preferred_element_type=jnp.float32)
        gsq = jnp.dot(scat_ref[...], sumsq_sc[...],
                      preferred_element_type=jnp.float32)
        mean_g = gsum * inv_count
        var_g = jnp.maximum(gsq * inv_count - mean_g * mean_g, 0.0)
        rstd_g = jax.lax.rsqrt(var_g + eps)
        mean_c = jnp.dot(scat_t_ref[...], mean_g, preferred_element_type=jnp.float32)
        rstd_c = jnp.dot(scat_t_ref[...], rstd_g, preferred_element_type=jnp.float32)
        sc = gamma_ref[...] * rstd_c
        scale_ref[...] = sc
        shift_ref[...] = beta_ref[...] - mean_c * sc


# --------------------------------------------------------------------------
# Pass 2: normalize + fused Q/K/V projection (scale folded into Wq/bq)
# --------------------------------------------------------------------------
def _qkv_kernel(x_ref, scale_ref, shift_ref, w_ref, b_ref, q_ref, k_ref, v_ref):
    C = q_ref.shape[-1]
    xn = x_ref[...] * scale_ref[...] + shift_ref[...]         # (C, ts) f32
    xn = xn.astype(w_ref.dtype)                               # bf16 MXU inputs
    # (ts, 3C) = xn^T @ W_qkv : contract the C axes (transposed-LHS matmul),
    # one long-N MXU contraction instead of three.
    qkv = jax.lax.dot_general(xn, w_ref[...], (((0,), (0,)), ((), ())),
                              preferred_element_type=jnp.float32) + b_ref[...]
    q_ref[...] = qkv[:, :C].astype(q_ref.dtype)
    k_ref[...] = qkv[:, C:2 * C].astype(k_ref.dtype)
    v_ref[...] = qkv[:, 2 * C:].astype(v_ref.dtype)


# --------------------------------------------------------------------------
# Pass 3: flash attention (online softmax) + output projection + residual,
#         output written channels-first (B, C, S)
# --------------------------------------------------------------------------
def _flash_kernel(q_ref, k_ref, v_ref, x_ref, wo_ref, bo_ref, o_ref,
                  m_sc, l_sc, acc_sc, *, approx_recip):
    ki = pl.program_id(2)

    @pl.when(ki == 0)
    def _init():
        m_sc[...] = jnp.full_like(m_sc, -jnp.inf)
        l_sc[...] = jnp.zeros_like(l_sc)
        acc_sc[...] = jnp.zeros_like(acc_sc)

    # (tq, C) x (tk, C) contracting the C axes -> (tq, tk); no explicit k.T.
    s = jax.lax.dot_general(q_ref[...], k_ref[...], (((1,), (1,)), ((), ())),
                            preferred_element_type=jnp.float32)
    m_prev = m_sc[...]
    m_new = jnp.maximum(m_prev, jnp.max(s, axis=-1, keepdims=True))
    alpha = jnp.exp(m_prev - m_new)
    p = jnp.exp(s - m_new)
    l_sc[...] = alpha * l_sc[...] + jnp.sum(p, axis=-1, keepdims=True)
    acc_sc[...] = alpha * acc_sc[...] + jnp.dot(
        p.astype(v_ref.dtype), v_ref[...], preferred_element_type=jnp.float32)
    m_sc[...] = m_new

    @pl.when(ki == pl.num_programs(2) - 1)
    def _finalize():
        attn = acc_sc[...] * pl.reciprocal(l_sc[...], approx=approx_recip)  # (tq, C)
        # out_ct[c_out, t] = sum_cin Wo[c_out, c_in] * attn[t, c_in]
        # Contract the last dims of both (A.Bt form, MXU-native): result is
        # already (C, tq), so no in-kernel or HBM transpose is needed.
        out_ct = jax.lax.dot_general(wo_ref[...], attn.astype(wo_ref.dtype),
                                     (((1,), (1,)), ((), ())),
                                     preferred_element_type=jnp.float32)
        o_ref[...] = out_ct + bo_ref[...] + x_ref[...]        # residual (C, tq) f32


# --------------------------------------------------------------------------
# Wrapper helpers
# --------------------------------------------------------------------------
def _vmem_budget():
    """~75% of this generation's per-core VMEM (v7x 64 MiB fallback)."""
    cap = 64 * 1024 * 1024
    try:
        cap = int(pltpu.get_tpu_info().vmem_capacity_bytes)
    except Exception:
        pass
    return int(0.75 * cap)


def _tile_candidates(n, target, quantum=128):
    """Divisors of n that are multiples of `quantum` and <= target, descending."""
    if n <= target:
        return [n]
    cands = [t for t in range(quantum, min(n, target) + 1, quantum) if n % t == 0]
    # TODO(synk): pad S to a multiple of 128 (with masking) instead of falling
    # back to a single full-S tile when no lane-aligned divisor exists.
    return sorted(cands, reverse=True) if cands else [n]


def _choose_tile(n, target, est_fn, budget, quantum=128):
    cands = _tile_candidates(n, target, quantum)
    for t in cands:
        if est_fn(t) <= budget:
            return t
    return cands[-1]


def _check_tile(name, t, n):
    assert n % t == 0, f"{name}={t} must divide S={n}"
    assert t == n or t % 128 == 0, f"{name}={t} must be a multiple of 128 (or == S={n})"


# --------------------------------------------------------------------------
# Wrapper
# --------------------------------------------------------------------------
def vae_attention_block(x_nchw, params, *, num_groups=32, eps=1e-5,
                        compute_dtype=jnp.bfloat16,
                        tq=None, tk=None, gn_ts=None, proj_ts=None):
    """x_nchw: (B, C, H, W) float32.  Returns (B, C, H, W) float32.

    compute_dtype controls the MXU matmul-input dtype (weights / Q / K / V / P);
    accumulation is always f32.  Pass jnp.float32 for bit-tight checks.
    """
    B, C, H, W = x_nchw.shape
    assert C % num_groups == 0
    S = H * W
    G = num_groups
    cpg = C // G

    f32 = jnp.float32
    cdt = jnp.dtype(compute_dtype)
    cb, fb = cdt.itemsize, 4
    budget = _vmem_budget()

    # Per-pass VMEM estimates (double-buffered pipeline blocks + big intermediates).
    def stats_bytes(ts):
        return (2 * C * ts * fb + 4 * G * C * fb + 8 * C * fb
                + 4 * C * fb + 2 * C * fb)

    def proj_bytes(ts):
        return (2 * C * ts * fb + 8 * C * fb + 2 * C * 3 * C * cb + 6 * C * fb
                + 6 * ts * C * cb + 3 * ts * C * fb + ts * C * cb)

    def flash_bytes(tq_, tk_):
        return (2 * tq_ * C * cb + 4 * tk_ * C * cb + 4 * C * tq_ * fb
                + 2 * C * C * cb + 2 * C * fb + (2 + C) * tq_ * fb
                + 2 * tq_ * tk_ * fb + tq_ * C * fb)

    # Tile defaults: lane-aligned divisors of S.  gn/proj target 1024 (HBM-bound,
    # amortize per-step overhead); flash target 512 (K/V are re-streamed per q
    # tile, ~tq flops/byte intensity -> MXU-bound on v6e/v7x at 512, already near
    # compute-bound on v5e).  Auto-shrunk to fit the VMEM budget.
    gn_ts = _choose_tile(S, 1024, stats_bytes, budget) if gn_ts is None else gn_ts
    proj_ts = _choose_tile(S, 1024, proj_bytes, budget) if proj_ts is None else proj_ts
    if tq is None or tk is None:
        t_flash = _choose_tile(S, 512, lambda t: flash_bytes(t, t), budget)
        tq = t_flash if tq is None else tq
        tk = t_flash if tk is None else tk
    for name, t in (("gn_ts", gn_ts), ("proj_ts", proj_ts), ("tq", tq), ("tk", tk)):
        _check_tile(name, t, S)
    assert stats_bytes(gn_ts) <= budget, "GroupNorm-stats tile exceeds VMEM budget"
    assert proj_bytes(proj_ts) <= budget, "QKV-projection tile exceeds VMEM budget"
    assert flash_bytes(tq, tk) <= budget, "flash-attention tiles exceed VMEM budget"

    def vmem_limit(est):
        # 2x headroom for Mosaic internal scratch / pipeline buffers, clamped to
        # the generation-aware budget (never requests all of v7x's 64 MiB).
        return int(min(max(2 * est, 16 * 1024 * 1024), budget))

    # NCHW -> (B, C, S) is a free reshape; all passes read/write channels-first,
    # so there is no HBM transpose of the activations at either end.
    x_bcs = x_nchw.reshape(B, C, S).astype(f32)

    # Thin group scatter/broadcast matrices (replace the dense (C, C) matrix).
    grp = jnp.arange(C) // cpg
    scat = (jnp.arange(G)[:, None] == grp[None, :]).astype(f32)    # (G, C)
    scat_t = scat.T                                                # (C, G)

    gamma = params["gamma"].reshape(C, 1).astype(f32)
    beta = params["beta"].reshape(C, 1).astype(f32)

    # PyTorch Linear: y = x @ W.T + b with W (out, in).  Fold 1/sqrt(d_head)
    # (d_head == C, single head) into Wq/bq, fuse Q/K/V into one (C, 3C) weight,
    # cast matmul inputs to compute_dtype.  Biases stay f32 (added post-accum).
    attn_scale = 1.0 / math.sqrt(float(C))
    w_qkv = jnp.concatenate([(params["wq"] * attn_scale).T,
                             params["wk"].T, params["wv"].T], axis=1).astype(cdt)
    b_qkv = jnp.concatenate([params["bq"] * attn_scale,
                             params["bk"], params["bv"]]).reshape(1, 3 * C).astype(f32)
    wo = params["wo"].astype(cdt)                 # kept (out, in): A.Bt contraction
    bo = params["bo"].reshape(C, 1).astype(f32)

    # Grid-invariant operands are DMA'd once (block index never changes); default
    # double-buffering kept for compatibility, cost included in the VMEM estimates.
    const = lambda shape: pl.BlockSpec(shape, lambda *idx: (0,) * len(shape))

    # ---- pass 1: GroupNorm statistics -> per-channel scale / shift --------
    ns = S // gn_ts
    scale_c, shift_c = pl.pallas_call(
        functools.partial(_gn_stats_kernel,
                          inv_count=1.0 / float(cpg * S), eps=float(eps)),
        out_shape=(jax.ShapeDtypeStruct((B, C, 1), f32),
                   jax.ShapeDtypeStruct((B, C, 1), f32)),
        grid_spec=pltpu.PrefetchScalarGridSpec(
            num_scalar_prefetch=0,
            grid=(B, ns),
            in_specs=[
                pl.BlockSpec((None, C, gn_ts), lambda b, s: (b, 0, s)),   # x (B,C,S)
                const((G, C)), const((C, G)),                              # scat, scat_t
                const((C, 1)), const((C, 1)),                              # gamma, beta
            ],
            out_specs=(
                pl.BlockSpec((None, C, 1), lambda b, s: (b, 0, 0)),
                pl.BlockSpec((None, C, 1), lambda b, s: (b, 0, 0)),
            ),
            scratch_shapes=[pltpu.VMEM((C, 1), f32),
                            pltpu.VMEM((C, 1), f32)],
        ),
        compiler_params=pltpu.CompilerParams(
            dimension_semantics=("parallel", "arbitrary"),
            vmem_limit_bytes=vmem_limit(stats_bytes(gn_ts))),
    )(x_bcs, scat, scat_t, gamma, beta)

    # ---- pass 2: normalize + fused QKV projection --------------------------
    nsp = S // proj_ts
    q, k, v = pl.pallas_call(
        _qkv_kernel,
        out_shape=tuple(jax.ShapeDtypeStruct((B, S, C), cdt) for _ in range(3)),
        grid_spec=pltpu.PrefetchScalarGridSpec(
            num_scalar_prefetch=0,
            grid=(B, nsp),
            in_specs=[
                pl.BlockSpec((None, C, proj_ts), lambda b, s: (b, 0, s)),  # x (B,C,S)
                pl.BlockSpec((None, C, 1), lambda b, s: (b, 0, 0)),        # scale
                pl.BlockSpec((None, C, 1), lambda b, s: (b, 0, 0)),        # shift
                const((C, 3 * C)), const((1, 3 * C)),                      # w_qkv, b_qkv
            ],
            out_specs=tuple(
                pl.BlockSpec((None, proj_ts, C), lambda b, s: (b, s, 0))
                for _ in range(3)),
        ),
        compiler_params=pltpu.CompilerParams(
            dimension_semantics=("parallel", "parallel"),
            vmem_limit_bytes=vmem_limit(proj_bytes(proj_ts))),
    )(x_bcs, scale_c, shift_c, w_qkv, b_qkv)

    # ---- pass 3: flash attention + output projection + residual -----------
    # TODO(synk): on v6e (128 MiB VMEM) K/V could be made fully VMEM-resident
    # (single kv grid step, in-kernel pl.loop) when 2*S*C*2B fits, cutting K/V
    # HBM reads from nq x to 1 x per batch.
    nq, nk = S // tq, S // tk
    approx_recip = bool(cdt != jnp.dtype(jnp.float32))
    out_bcs = pl.pallas_call(
        functools.partial(_flash_kernel, approx_recip=approx_recip),
        out_shape=jax.ShapeDtypeStruct((B, C, S), f32),
        grid_spec=pltpu.PrefetchScalarGridSpec(
            num_scalar_prefetch=0,
            grid=(B, nq, nk),
            in_specs=[
                pl.BlockSpec((None, tq, C), lambda b, i, j: (b, i, 0)),   # q (B,S,C)
                pl.BlockSpec((None, tk, C), lambda b, i, j: (b, j, 0)),   # k
                pl.BlockSpec((None, tk, C), lambda b, i, j: (b, j, 0)),   # v
                pl.BlockSpec((None, C, tq), lambda b, i, j: (b, 0, i)),   # residual (B,C,S)
                const((C, C)), const((C, 1)),                             # wo, bo
            ],
            out_specs=pl.BlockSpec((None, C, tq), lambda b, i, j: (b, 0, i)),
            scratch_shapes=[
                pltpu.VMEM((tq, 1), f32),   # running max
                pltpu.VMEM((tq, 1), f32),   # running sum
                pltpu.VMEM((tq, C), f32),   # output accumulator
            ],
        ),
        compiler_params=pltpu.CompilerParams(
            dimension_semantics=("parallel", "parallel", "arbitrary"),
            vmem_limit_bytes=vmem_limit(flash_bytes(tq, tk))),
    )(q, k, v, x_bcs, wo, bo)

    # (B, C, S) -> NCHW is a free reshape (no HBM transpose).
    return out_bcs.reshape(B, C, H, W)


# --------------------------------------------------------------------------
# Pure-JAX reference mirroring the PyTorch module
# --------------------------------------------------------------------------
def _reference(x_nchw, params, *, num_groups=32, eps=1e-5):
    B, C, H, W = x_nchw.shape
    S = H * W
    x = x_nchw.astype(jnp.float32)
    xg = x.reshape(B, num_groups, C // num_groups, H, W)
    mean = jnp.mean(xg, axis=(2, 3, 4), keepdims=True)
    var = jnp.mean((xg - mean) ** 2, axis=(2, 3, 4), keepdims=True)
    xn = ((xg - mean) / jnp.sqrt(var + eps)).reshape(B, C, H, W)
    xn = xn * params["gamma"].reshape(1, C, 1, 1) + params["beta"].reshape(1, C, 1, 1)
    t = jnp.transpose(xn.reshape(B, C, S), (0, 2, 1))
    q = t @ params["wq"].T + params["bq"]
    k = t @ params["wk"].T + params["bk"]
    v = t @ params["wv"].T + params["bv"]
    w = (q @ jnp.swapaxes(k, -1, -2)) / math.sqrt(C)
    w = jax.nn.softmax(w, axis=-1)
    o = w @ v
    o = o @ params["wo"].T + params["bo"]
    o = jnp.transpose(o, (0, 2, 1)).reshape(B, C, H, W)
    return o + x


def _init_params(key, channels):
    ks = jax.random.split(key, 10)
    C = channels
    std = 1.0 / math.sqrt(C)
    return {
        "gamma": 1.0 + 0.1 * jax.random.normal(ks[0], (C,), jnp.float32),
        "beta": 0.1 * jax.random.normal(ks[1], (C,), jnp.float32),
        "wq": std * jax.random.normal(ks[2], (C, C), jnp.float32),
        "wk": std * jax.random.normal(ks[3], (C, C), jnp.float32),
        "wv": std * jax.random.normal(ks[4], (C, C), jnp.float32),
        "wo": std * jax.random.normal(ks[5], (C, C), jnp.float32),
        "bq": std * jax.random.normal(ks[6], (C,), jnp.float32),
        "bk": std * jax.random.normal(ks[7], (C,), jnp.float32),
        "bv": std * jax.random.normal(ks[8], (C,), jnp.float32),
        "bo": std * jax.random.normal(ks[9], (C,), jnp.float32),
    }


if __name__ == "__main__":
    # GroupNorm(32, C) needs C % 32 == 0; C = 64 gives 2 channels per group so
    # the group reduction is genuinely exercised.  H = W = 16 -> S = 256, so
    # 128-wide (lane-aligned) tiles exercise multi-step GroupNorm accumulation
    # and the flash kv loop (grids 2x2, 2x2 and 2x2x2).
    B, C, H, W = 2, 64, 16, 16
    key = jax.random.PRNGKey(0)
    kx, kp = jax.random.split(key)
    x = jax.random.normal(kx, (B, C, H, W), jnp.float32)
    params = _init_params(kp, C)

    ref = _reference(x, params)

    # Default bf16 MXU path with explicit 128 tiles so every grid axis runs
    # multiple steps.
    out_bf16 = vae_attention_block(x, params, tq=128, tk=128, gn_ts=128, proj_ts=128)
    out_bf16 = jax.block_until_ready(out_bf16)
    assert out_bf16.shape == (B, C, H, W)
    err_bf16 = float(jnp.max(jnp.abs(out_bf16 - ref)))
    assert err_bf16 < 1.5e-1, err_bf16   # bf16 matmul-input tolerance

    # f32 compute path (exact reciprocal, auto tiles -> single tile at this S)
    # for a tight numerical check of the kernel math.
    out_f32 = vae_attention_block(x, params, compute_dtype=jnp.float32)
    out_f32 = jax.block_until_ready(out_f32)
    err_f32 = float(jnp.max(jnp.abs(out_f32 - ref)))
    assert jnp.allclose(out_f32, ref, atol=1e-4, rtol=1e-4), err_f32

    print("KERNEL_OK")
</pallas_src>

<mosaic_0001>
module attributes {stable_mosaic.version = 11 : i64} {
  func.func @_gn_stats_kernel(%arg0: i32, %arg1: i32, %arg2: memref<1x64x128xf32, #tpu.memory_space<vmem>>, %arg3: memref<32x64xf32, #tpu.memory_space<vmem>>, %arg4: memref<64x32xf32, #tpu.memory_space<vmem>>, %arg5: memref<64x1xf32, #tpu.memory_space<vmem>>, %arg6: memref<64x1xf32, #tpu.memory_space<vmem>>, %arg7: memref<1x64x1xf32, #tpu.memory_space<vmem>>, %arg8: memref<1x64x1xf32, #tpu.memory_space<vmem>>, %arg9: memref<64x1xf32, #tpu.memory_space<vmem>>, %arg10: memref<64x1xf32, #tpu.memory_space<vmem>>) attributes {dimension_semantics = [#tpu.dimension_semantics<parallel>, #tpu.dimension_semantics<arbitrary>], iteration_bounds = array<i64: 2, 2>, scalar_prefetch = 0 : i64, scratch_operands = 2 : i64, tpu.core_type = #tpu.core_type<tc>, window_params = [{transform_indices = @transform_0, window_bounds = array<i64: 1, 64, 128>}, {pipeline_mode = #tpu.pipeline_mode<synchronous>, transform_indices = @transform_1, window_bounds = array<i64: 32, 64>}, {pipeline_mode = #tpu.pipeline_mode<synchronous>, transform_indices = @transform_2, window_bounds = array<i64: 64, 32>}, {pipeline_mode = #tpu.pipeline_mode<synchronous>, transform_indices = @transform_3, window_bounds = array<i64: 64, 1>}, {pipeline_mode = #tpu.pipeline_mode<synchronous>, transform_indices = @transform_4, window_bounds = array<i64: 64, 1>}, {transform_indices = @transform_5, window_bounds = array<i64: 1, 64, 1>}, {transform_indices = @transform_6, window_bounds = array<i64: 1, 64, 1>}]} {
    %c0_i32 = arith.constant 0 : i32
    %0 = arith.cmpi eq, %arg1, %c0_i32 : i32
    %1 = arith.extui %0 : i1 to i32
    %c0_i32_0 = arith.constant 0 : i32
    %2 = arith.cmpi ne, %1, %c0_i32_0 : i32
    scf.if %2 {
      %cst_13 = arith.constant 0.000000e+00 : f32
      %19 = vector.broadcast %cst_13 : f32 to vector<64x1xf32>
      %c0_14 = arith.constant 0 : index
      %c0_15 = arith.constant 0 : index
      %20 = vector.load %arg9[%c0_14, %c0_15] : memref<64x1xf32, #tpu.memory_space<vmem>>, vector<64x1xf32>
      tpu.vector_store %arg9[%c0_14, %c0_15], %19 {strides = array<i32>} : memref<64x1xf32, #tpu.memory_space<vmem>>, vector<64x1xf32>,
      %cst_16 = arith.constant 0.000000e+00 : f32
      %21 = vector.broadcast %cst_16 : f32 to vector<64x1xf32>
      %c0_17 = arith.constant 0 : index
      %c0_18 = arith.constant 0 : index
      %22 = vector.load %arg10[%c0_17, %c0_18] : memref<64x1xf32, #tpu.memory_space<vmem>>, vector<64x1xf32>
      tpu.vector_store %arg10[%c0_17, %c0_18], %21 {strides = array<i32>} : memref<64x1xf32, #tpu.memory_space<vmem>>, vector<64x1xf32>,
    } else {
    }
    %c0 = arith.constant 0 : index
    %c0_1 = arith.constant 0 : index
    %c0_2 = arith.constant 0 : index
    %3 = vector.load %arg2[%c0, %c0_1, %c0_2] : memref<1x64x128xf32, #tpu.memory_space<vmem>>, vector<1x64x128xf32>
    %4 = vector.shape_cast %3 : vector<1x64x128xf32> to vector<64x128xf32>
    %c0_3 = arith.constant 0 : index
    %c0_4 = arith.constant 0 : index
    %5 = vector.load %arg9[%c0_3, %c0_4] : memref<64x1xf32, #tpu.memory_space<vmem>>, vector<64x1xf32>
    %cst = arith.constant dense<0.000000e+00> : vector<64xf32>
    %6 = vector.multi_reduction <add>, %4, %cst [1] : vector<64x128xf32> to vector<64xf32>
    %7 = vector.shape_cast %6 : vector<64xf32> to vector<64x1xf32>
    %8 = arith.addf %5, %7 : vector<64x1xf32>
    %c0_5 = arith.constant 0 : index
    %c0_6 = arith.constant 0 : index
    %9 = vector.load %arg9[%c0_5, %c0_6] : memref<64x1xf32, #tpu.memory_space<vmem>>, vector<64x1xf32>
    tpu.vector_store %arg9[%c0_5, %c0_6], %8 {strides = array<i32>} : memref<64x1xf32, #tpu.memory_space<vmem>>, vector<64x1xf32>,
    %c0_7 = arith.constant 0 : index
    %c0_8 = arith.constant 0 : index
    %10 = vector.load %arg10[%c0_7, %c0_8] : memref<64x1xf32, #tpu.memory_space<vmem>>, vector<64x1xf32>
    %11 = arith.mulf %4, %4 : vector<64x128xf32>
    %cst_9 = arith.constant dense<0.000000e+00> : vector<64xf32>
    %12 = vector.multi_reduction <add>, %11, %cst_9 [1] : vector<64x128xf32> to vector<64xf32>
    %13 = vector.shape_cast %12 : vector<64xf32> to vector<64x1xf32>
    %14 = arith.addf %10, %13 : vector<64x1xf32>
    %c0_10 = arith.constant 0 : index
    %c0_11 = arith.constant 0 : index
    %15 = vector.load %arg10[%c0_10, %c0_11] : memref<64x1xf32, #tpu.memory_space<vmem>>, vector<64x1xf32>
    tpu.vector_store %arg10[%c0_10, %c0_11], %14 {strides = array<i32>} : memref<64x1xf32, #tpu.memory_space<vmem>>, vector<64x1xf32>,
    %c1_i32 = arith.constant 1 : i32
    %16 = arith.cmpi eq, %arg1, %c1_i32 : i32
    %17 = arith.extui %16 : i1 to i32
    %c0_i32_12 = arith.constant 0 : i32
    %18 = arith.cmpi ne, %17, %c0_i32_12 : i32
    scf.if %18 {
      %c0_13 = arith.constant 0 : index
      %c0_14 = arith.constant 0 : index
      %19 = vector.load %arg3[%c0_13, %c0_14] : memref<32x64xf32, #tpu.memory_space<vmem>>, vector<32x64xf32>
      %c0_15 = arith.constant 0 : index
      %c0_16 = arith.constant 0 : index
      %20 = vector.load %arg9[%c0_15, %c0_16] : memref<64x1xf32, #tpu.memory_space<vmem>>, vector<64x1xf32>
      %cst_17 = arith.constant dense<0.000000e+00> : vector<32x1xf32>
      %21 = tpu.matmul %19, %20, %cst_17 {dimension_numbers = #tpu.dot_dimension_numbers<[1], [0], [0], [1], [0, 0, 1, 1], [], []>} : vector<32x64xf32>, vector<64x1xf32>, vector<32x1xf32> -> vector<32x1xf32>
      %c0_18 = arith.constant 0 : index
      %c0_19 = arith.constant 0 : index
      %22 = vector.load %arg3[%c0_18, %c0_19] : memref<32x64xf32, #tpu.memory_space<vmem>>, vector<32x64xf32>
      %c0_20 = arith.constant 0 : index
      %c0_21 = arith.constant 0 : index
      %23 = vector.load %arg10[%c0_20, %c0_21] : memref<64x1xf32, #tpu.memory_space<vmem>>, vector<64x1xf32>
      %cst_22 = arith.constant dense<0.000000e+00> : vector<32x1xf32>
      %24 = tpu.matmul %22, %23, %cst_22 {dimension_numbers = #tpu.dot_dimension_numbers<[1], [0], [0], [1], [0, 0, 1, 1], [], []>} : vector<32x64xf32>, vector<64x1xf32>, vector<32x1xf32> -> vector<32x1xf32>
      %cst_23 = arith.constant 0.001953125 : f32
      %25 = vector.broadcast %cst_23 : f32 to vector<32x1xf32>
      %26 = arith.mulf %21, %25 : vector<32x1xf32>
      %cst_24 = arith.constant 0.001953125 : f32
      %27 = vector.broadcast %cst_24 : f32 to vector<32x1xf32>
      %28 = arith.mulf %24, %27 : vector<32x1xf32>
      %29 = arith.mulf %26, %26 : vector<32x1xf32>
      %30 = arith.subf %28, %29 : vector<32x1xf32>
      %cst_25 = arith.constant 0.000000e+00 : f32
      %31 = vector.broadcast %cst_25 : f32 to vector<32x1xf32>
      %32 = arith.maximumf %30, %31 : vector<32x1xf32>
      %cst_26 = arith.constant 9.99999974E-6 : f32
      %33 = vector.broadcast %cst_26 : f32 to vector<32x1xf32>
      %34 = arith.addf %32, %33 : vector<32x1xf32>
      %35 = math.rsqrt %34 : vector<32x1xf32>
      %c0_27 = arith.constant 0 : index
      %c0_28 = arith.constant 0 : index
      %36 = vector.load %arg4[%c0_27, %c0_28] : memref<64x32xf32, #tpu.memory_space<vmem>>, vector<64x32xf32>
      %cst_29 = arith.constant dense<0.000000e+00> : vector<64x1xf32>
      %37 = tpu.matmul %36, %26, %cst_29 {dimension_numbers = #tpu.dot_dimension_numbers<[1], [0], [0], [1], [0, 0, 1, 1], [], []>} : vector<64x32xf32>, vector<32x1xf32>, vector<64x1xf32> -> vector<64x1xf32>
      %c0_30 = arith.constant 0 : index
      %c0_31 = arith.constant 0 : index
      %38 = vector.load %arg4[%c0_30, %c0_31] : memref<64x32xf32, #tpu.memory_space<vmem>>, vector<64x32xf32>
      %cst_32 = arith.constant dense<0.000000e+00> : vector<64x1xf32>
      %39 = tpu.matmul %38, %35, %cst_32 {dimension_numbers = #tpu.dot_dimension_numbers<[1], [0], [0], [1], [0, 0, 1, 1], [], []>} : vector<64x32xf32>, vector<32x1xf32>, vector<64x1xf32> -> vector<64x1xf32>
      %c0_33 = arith.constant 0 : index
      %c0_34 = arith.constant 0 : index
      %40 = vector.load %arg5[%c0_33, %c0_34] : memref<64x1xf32, #tpu.memory_space<vmem>>, vector<64x1xf32>
      %41 = arith.mulf %40, %39 : vector<64x1xf32>
      %c0_35 = arith.constant 0 : index
      %c0_36 = arith.constant 0 : index
      %c0_37 = arith.constant 0 : index
      %42 = vector.load %arg7[%c0_35, %c0_36, %c0_37] : memref<1x64x1xf32, #tpu.memory_space<vmem>>, vector<1x64x1xf32>
      %43 = vector.shape_cast %42 : vector<1x64x1xf32> to vector<64x1xf32>
      %44 = vector.shape_cast %41 : vector<64x1xf32> to vector<1x64x1xf32>
      tpu.vector_store %arg7[%c0_35, %c0_36, %c0_37], %44 {strides = array<i32>} : memref<1x64x1xf32, #tpu.memory_space<vmem>>, vector<1x64x1xf32>,
      %c0_38 = arith.constant 0 : index
      %c0_39 = arith.constant 0 : index
      %45 = vector.load %arg6[%c0_38, %c0_39] : memref<64x1xf32, #tpu.memory_space<vmem>>, vector<64x1xf32>
      %46 = arith.mulf %37, %41 : vector<64x1xf32>
      %47 = arith.subf %45, %46 : vector<64x1xf32>
      %c0_40 = arith.constant 0 : index
      %c0_41 = arith.constant 0 : index
      %c0_42 = arith.constant 0 : index
      %48 = vector.load %arg8[%c0_40, %c0_41, %c0_42] : memref<1x64x1xf32, #tpu.memory_space<vmem>>, vector<1x64x1xf32>
      %49 = vector.shape_cast %48 : vector<1x64x1xf32> to vector<64x1xf32>
      %50 = vector.shape_cast %47 : vector<64x1xf32> to vector<1x64x1xf32>
      tpu.vector_store %arg8[%c0_40, %c0_41, %c0_42], %50 {strides = array<i32>} : memref<1x64x1xf32, #tpu.memory_space<vmem>>, vector<1x64x1xf32>,
    } else {
    }
    return
  }
  func.func @transform_0(%arg0: i32, %arg1: i32) -> (i32, i32, i32) {
    %c0_i32 = arith.constant 0 : i32
    %c0_i32_0 = arith.constant 0 : i32
    return %arg0, %c0_i32, %arg1 : i32, i32, i32
  }
  func.func @transform_1(%arg0: i32, %arg1: i32) -> (i32, i32) {
    %c0_i32 = arith.constant 0 : i32
    %c0_i32_0 = arith.constant 0 : i32
    %c0_i32_1 = arith.constant 0 : i32
    return %c0_i32, %c0_i32_0 : i32, i32
  }
  func.func @transform_2(%arg0: i32, %arg1: i32) -> (i32, i32) {
    %c0_i32 = arith.constant 0 : i32
    %c0_i32_0 = arith.constant 0 : i32
    %c0_i32_1 = arith.constant 0 : i32
    return %c0_i32, %c0_i32_0 : i32, i32
  }
  func.func @transform_3(%arg0: i32, %arg1: i32) -> (i32, i32) {
    %c0_i32 = arith.constant 0 : i32
    %c0_i32_0 = arith.constant 0 : i32
    %c0_i32_1 = arith.constant 0 : i32
    return %c0_i32, %c0_i32_0 : i32, i32
  }
  func.func @transform_4(%arg0: i32, %arg1: i32) -> (i32, i32) {
    %c0_i32 = arith.constant 0 : i32
    %c0_i32_0 = arith.constant 0 : i32
    %c0_i32_1 = arith.constant 0 : i32
    return %c0_i32, %c0_i32_0 : i32, i32
  }
  func.func @transform_5(%arg0: i32, %arg1: i32) -> (i32, i32, i32) {
    %c0_i32 = arith.constant 0 : i32
    %c0_i32_0 = arith.constant 0 : i32
    %c0_i32_1 = arith.constant 0 : i32
    return %arg0, %c0_i32, %c0_i32_0 : i32, i32, i32
  }
  func.func @transform_6(%arg0: i32, %arg1: i32) -> (i32, i32, i32) {
    %c0_i32 = arith.constant 0 : i32
    %c0_i32_0 = arith.constant 0 : i32
    %c0_i32_1 = arith.constant 0 : i32
    return %arg0, %c0_i32, %c0_i32_0 : i32, i32, i32
  }
}

</mosaic_0001>

<bundles_post_ra>
// kernel: tpu_custom_call.1
= control target key start
LH: loop header
LB: loop body
LE: loop exit
PB: predicated region body
PF: predicated region fallthrough
CT: control target
= control target key end

     0   :  { %s1440_s0 = inlined_call_operand.hbm [shape: f32[2,64,256], index: 0, kind: input, shape index: {}]   ;;  %s1441_s1 = inlined_call_operand.vmem [shape: f32[32,64], index: 1, kind: input, shape index: {}]   ;;  %s1442_s2 = inlined_call_operand.vmem [shape: f32[64,32], index: 2, kind: input, shape index: {}]   ;;  %s1443_s3 = inlined_call_operand.vmem [shape: f32[64,1], index: 3, kind: input, shape index: {}]   ;;  %s1444_s4 = inlined_call_operand.vmem [shape: f32[64,1], index: 4, kind: input, shape index: {}]   ;;  %s1445_s5 = inlined_call_operand.vmem [shape: f32[2,64,1], index: 5, kind: output, shape index: {0}]   ;;  %s1446_s6 = inlined_call_operand.vmem [shape: f32[2,64,1], index: 6, kind: output, shape index: {1}]  }
   0x1   :  { %1450 = sst [smem:[#allocation9_spill]] %s1444_s4 }
   0x2   :  { %12 = vsyncpa [#allocation5], 0 }
   0x3   :  { %14 = vsyncpa [#allocation5 + $0x1], 0  ;;  %s1134_s21 = smov 0   ;;  %s1136_s22 = smov 0  }
   0x4   :  { %s1138_s23 = smov 0   ;;  %s1140_s24 = smov 0  }
   0x5   :  { %s1142_s25 = smov 0   ;;  %s1144_s26 = smov 0  }
   0x6   :  { %s1146_s27 = smov 0   ;;  %s1148_s28 = smov 0  }
   0x7 LB: > { %s863_s29 = sadd.s32 4294967295, %s1093_s28   ;;  %s29_s30 = sadd.s32 1, %s1085_s26  ;;  %s1093_s28 = sphi %s1148_s28, %s20_s28   ;;  %s1089_s27 = sphi %s1146_s27, %s1464_s27   ;;  %s1085_s26 = sphi %s1144_s26, %s1463_s26   ;;  %s1081_s25 = sphi %s1142_s25, %s1462_s25   ;;  %s1077_s24 = sphi %s1140_s24, %s1461_s24   ;;  %s1073_s23 = sphi %s1138_s23, %s1460_s23   ;;  %s1069_s22 = sphi %s1136_s22, %s1459_s22   ;;  %s1065_s21 = sphi %s1134_s21, %s1458_s21  }
   0x8   : > { %p30_p0 = scmp.ge.s32.totalorder %s29_s30, 2  ;;  %s32_s7 = sadd.s32 1, %s1089_s27 }
   0x9   : > { %s41_s8 = sadd.s32 1, %s1073_s23  ;;  %p48_p1 = scmp.ne.s32.totalorder %s1073_s23, %s1069_s22 }
   0xa   : > { %s1466_s30 = smov (%p30_p0, %s29_s30), 0  ;;  %s1468_s7 = smov (!%p30_p0, %s32_s7), %s1089_s27 }
   0xb   : > { %1451 = sst [smem:[#allocation7_spill]] %s1466_s30  ;;  %s37_s9 = ssub.s32 %s1085_s26, %s1466_s30 }
   0xc   : > { %p49_p2 = scmp.eq.s32.totalorder %s1093_s28, 0  ;;  %p34_p3 = scmp.ge.s32.totalorder %s1468_s7, 2 }
   0xd   : > { %p54_p4 = scmp.ne.s32.totalorder %s1069_s22, %s1065_s21  ;;  %p55_p6 = scmp.eq.s32.totalorder %s863_s29, 0 }
   0xe   : > { %p1185_p5 = por %p49_p2, %p48_p1  ;;  %s1470_s7 = smov (%p34_p3, %s1468_s7), 0 }
   0xf   : > { %1453 = sst [smem:[#allocation8_spill]] %s1470_s7  ;;  %p1191_p7 = por %p55_p6, %p54_p4 }
  0x10   : > { %s36_s12 = ssub.s32 %s1089_s27, %s1470_s7  ;;  %p920_p8 = scmp.lt.s32.totalorder %s1093_s28, 4 }
  0x11   : > { %s38_s13 = sor.u32 %s37_s9, %s36_s12  ;;  %s226_s14 = sand.u32 1, %s1073_s23  }
  0x12   : > { %p39_p9 = scmp.eq.s32.totalorder %s38_s13, 0  ;;  %s867_s15 = sshll.u32 %s226_s14, 6 }
  0x13   : > { %s868_s16 = sshll.u32 %s1089_s27, 4  ;;  %s230_s20 = scalar_lea.vmem [#allocation4], %s867_s15 }
  0x14   : > { %s1201_s17 = scalar_select %p39_p9, %s1073_s23, %s41_s8  }
  0x15   : > { %s234_s18 = sadd.s32 %s1085_s26, %s868_s16  ;;  %s239_s21 = sshll.u32 %s230_s20, 4  ;;  %s240_s21 = int_to_ptr.vmem [resolvable:$true] %s239_s21 }
  0x16   : > { %s869_s19 = sshll.u32 %s234_s18, 3  ;;  %p917_p10 = pnand %p920_p8, %p1185_p5 }
  0x17   : > { %s236_s4 = scalar_lea.hbm %s1440_s0, %s869_s19  ;;  %p870_p11 = scmp.ge.s32.totalorder %s1093_s28, 1 }
  0x18   : > { %s237_s7 = sshll.u32 %s236_s4, 4  ;;  %s227_s9 = scalar_lea.sflag [#allocation5], %s226_s14  ;;  %s238_s7 = int_to_ptr.hbm [resolvable:$true] %s237_s7 }
  0x19   : > { %s1095_s12 = smov 256   ;;  %s1096_s8 = smov 128  }
  0x1a   : > { %s1097_s13 = smov 8   ;;  %p247_p12 = scmp.lt.s32.totalorder %s1093_s28, 5 }
  0x1b   : > { %919 = dma.hbm_to_vmem [thread:$0]  (!%p917_p10), %s238_s7, 1024, %s240_s21, %s227_s9, %s1095_s12, %s1096_s8, %s1097_s13  }
  0x1c   : > { %p248_p13 = pnand %p870_p11, %p247_p12 }
  0x1d   : > { %s253_s15 = sand.u32 (!%p248_p13), 1, %s1069_s22  }
  0x1e   : > { %251 = sbr.rel (%p248_p13) target bundleno = 612 (0x264), region = 40  ;;  %s871_s30 = sshll.u32 (!%p248_p13), %s253_s15, 6 }
  0x1f   : > { %s254_s16 = scalar_lea.sflag (!%p248_p13), [#allocation5], %s253_s15  ;;  %s1214_s18 = scalar_lea.vmem (!%p248_p13), [#allocation4], %s871_s30 }
  0x23   : > { %1060 = dma.done.wait (%p1191_p7), %s254_s16, 1024  }
  0x24   : > { %1062 = vsyncadd (%p1191_p7), %s254_s16, 4294966272  ;;  %p292_p0 = scmp.lt.s32.totalorder %s1081_s25, 1  ;;  %p876_p1 = scmp.ne.s32.totalorder %s1077_s24, 0 }
  0x26   : > { %s1472_s25 = smov (!%p292_p0, %s1081_s25), 1  ;;  %305 = sbr.rel (%p876_p1) target bundleno = 60 (0x3c), region = 48 }
  0x27   : > { %s904_s4 = sshll.u32 %s1472_s25, 6 }
  0x28   : > { %s1225_s14 = scalar_lea.vmem %s1445_s5, %s904_s4  ;;  %s1230_s21 = scalar_lea.vmem %s1446_s6, %s904_s4 }
  0x2b   : > { %vm306_vm0 = vcmask 7168   ;;  %v1098_v0 = vmov 0.0  }
  0x2c   : > { %307 = vst.msk [vmem:[#allocation2] sm:$0xff] %vm306_vm0, %v1098_v0 }
  0x2d   : > { %308 = vst.msk [vmem:[#allocation2 + $0x8] sm:$0xff] %vm306_vm0, %v1098_v0 }
  0x2e   : > { %309 = vst.msk [vmem:[#allocation2 + $0x10] sm:$0xff] %vm306_vm0, %v1098_v0 }
  0x2f   : > { %310 = vst.msk [vmem:[#allocation2 + $0x18] sm:$0xff] %vm306_vm0, %v1098_v0 }
  0x30   : > { %311 = vst.msk [vmem:[#allocation2 + $0x20] sm:$0xff] %vm306_vm0, %v1098_v0 }
  0x31   : > { %312 = vst.msk [vmem:[#allocation2 + $0x28] sm:$0xff] %vm306_vm0, %v1098_v0 }
  0x32   : > { %313 = vst.msk [vmem:[#allocation2 + $0x30] sm:$0xff] %vm306_vm0, %v1098_v0 }
  0x33   : > { %314 = vst.msk [vmem:[#allocation2 + $0x38] sm:$0xff] %vm306_vm0, %v1098_v0 }
  0x34   : > { %315 = vst.msk [vmem:[#allocation3] sm:$0xff] %vm306_vm0, %v1098_v0 }
  0x35   : > { %316 = vst.msk [vmem:[#allocation3 + $0x8] sm:$0xff] %vm306_vm0, %v1098_v0 }
  0x36   : > { %317 = vst.msk [vmem:[#allocation3 + $0x10] sm:$0xff] %vm306_vm0, %v1098_v0 }
  0x37   : > { %318 = vst.msk [vmem:[#allocation3 + $0x18] sm:$0xff] %vm306_vm0, %v1098_v0 }
  0x38   : > { %319 = vst.msk [vmem:[#allocation3 + $0x20] sm:$0xff] %vm306_vm0, %v1098_v0 }
  0x39   : > { %320 = vst.msk [vmem:[#allocation3 + $0x28] sm:$0xff] %vm306_vm0, %v1098_v0 }
  0x3a   : > { %321 = vst.msk [vmem:[#allocation3 + $0x30] sm:$0xff] %vm306_vm0, %v1098_v0 }
  0x3b   : > { %322 = vst.msk [vmem:[#allocation3 + $0x38] sm:$0xff] %vm306_vm0, %v1098_v0 }
  0x3c PF: > { %v323_v1 = vld [vmem:[%s1214_s18] sm:$0xff]  ;;  %v325_v3 = vld [vmem:[%s1214_s18 + $0x10] sm:$0xff]  ;;  %v324_v4 = vld [vmem:[%s1214_s18 + $0x8] sm:$0xff]  ;;  %vm363_vm1 = vcmask 7168   ;;  %p877_p2 = scmp.ne.s32.totalorder %s1077_s24, 1 }
  0x3d   : > { %v327_v2 = vld [vmem:[%s1214_s18 + $0x20] sm:$0xff]  ;;  %339 = vadd.xlane.f32.xlu0 %v323_v1  ;;  %343 = vadd.xlane.f32.xlu1 %v325_v3  ;;  %v328_v5 = vld [vmem:[%s1214_s18 + $0x28] sm:$0xff]  ;;  %v326_v6 = vld [vmem:[%s1214_s18 + $0x18] sm:$0xff]  ;;  %v380_v7 = vmul.f32 %v323_v1, %v323_v1  ;;  %v381_v10 = vmul.f32 %v324_v4, %v324_v4  ;;  %v382_v12 = vmul.f32 %v325_v3, %v325_v3 }
  0x3e   : > { %347 = vadd.xlane.f32.xlu2 %v327_v2  ;;  %v329_v8 = vld [vmem:[%s1214_s18 + $0x30] sm:$0xff]  ;;  %v330_v9 = vld [vmem:[%s1214_s18 + $0x38] sm:$0xff]  ;;  %v383_v11 = vmul.f32 %v326_v6, %v326_v6  ;;  %v384_v13 = vmul.f32 %v327_v2, %v327_v2  ;;  %v385_v15 = vmul.f32 %v328_v5, %v328_v5  ;;  %v331_v17 = vld [vmem:[#allocation2] sm:$0xff]  ;;  %s1455_s18 = sld [smem:[#allocation9_spill]] (!%p877_p2) }
  0x3f   : > { %v386_v14 = vmul.f32 %v329_v8, %v329_v8  ;;  %v387_v16 = vmul.f32 %v330_v9, %v330_v9  ;;  %v335_v18 = vld [vmem:[#allocation2 + $0x20] sm:$0xff]  ;;  %v333_v19 = vld [vmem:[#allocation2 + $0x10] sm:$0xff]  ;;  %v332_v26 = vld [vmem:[#allocation2 + $0x8] sm:$0xff] }
  0x40   : > { %v336_v27 = vld [vmem:[#allocation2 + $0x28] sm:$0xff]  ;;  %v334_v28 = vld [vmem:[#allocation2 + $0x18] sm:$0xff]  ;;  %v337_v35 = vld [vmem:[#allocation2 + $0x30] sm:$0xff] }
  0x41   : > { %v372_v36 = vld [vmem:[#allocation3] sm:$0xff]  ;;  %v338_v37 = vld [vmem:[#allocation2 + $0x38] sm:$0xff]  ;;  %v373_v44 = vld [vmem:[#allocation3 + $0x8] sm:$0xff] }
  0x42   : > { %v375_v45 = vld [vmem:[#allocation3 + $0x18] sm:$0xff]  ;;  %v374_v46 = vld [vmem:[#allocation3 + $0x10] sm:$0xff]  ;;  %v376_v53 = vld [vmem:[#allocation3 + $0x20] sm:$0xff] }
  0x43   : > { %v378_v54 = vld [vmem:[#allocation3 + $0x30] sm:$0xff]  ;;  %v377_v55 = vld [vmem:[#allocation3 + $0x28] sm:$0xff]  ;;  %v379_v62 = vld [vmem:[#allocation3 + $0x38] sm:$0xff] }
  0x45   : > { %341 = vadd.xlane.f32.xlu0 %v324_v4  ;;  %345 = vadd.xlane.f32.xlu1 %v326_v6 }
  0x46   : > { %349 = vadd.xlane.f32.xlu2 %v328_v5 }
  0x4d   : > { %351 = vadd.xlane.f32.xlu0 %v329_v8  ;;  %353 = vadd.xlane.f32.xlu1 %v330_v9 }
  0x4e   : > { %388 = vadd.xlane.f32.xlu2 %v380_v7 }
  0x55   : > { %390 = vadd.xlane.f32.xlu0 %v381_v10  ;;  %392 = vadd.xlane.f32.xlu1 %v382_v12 }
  0x56   : > { %394 = vadd.xlane.f32.xlu2 %v383_v11 }
  0x5d   : > { %396 = vadd.xlane.f32.xlu0 %v384_v13  ;;  %398 = vadd.xlane.f32.xlu1 %v385_v15 }
  0x5e   : > { %400 = vadd.xlane.f32.xlu2 %v386_v14 }
  0x65   : > { %402 = vadd.xlane.f32.xlu0 %v387_v16 }
  0xb0   : > { %v340_v20 = vpop.xlane.xlu0 %339  ;;  %v344_v24 = vpop.xlane.xlu1 %343 }
  0xb1   : > { %v348_v21 = vpop.xlane.xlu2 %347  ;;  %v355_v22 = vadd.f32 %v340_v20, %v331_v17  ;;  %v357_v25 = vadd.f32 %v344_v24, %v333_v19 }
  0xb2   : > { %v359_v23 = vadd.f32 %v348_v21, %v335_v18 }
  0xb3   : > { %364 = vst.msk [vmem:[#allocation2] sm:$0xff] %vm363_vm1, %v355_v22 }
  0xb4   : > { %368 = vst.msk [vmem:[#allocation2 + $0x20] sm:$0xff] %vm363_vm1, %v359_v23 }
  0xb5   : > { %366 = vst.msk [vmem:[#allocation2 + $0x10] sm:$0xff] %vm363_vm1, %v357_v25 }
  0xb8   : > { %v342_v29 = vpop.xlane.xlu0 %341  ;;  %v346_v33 = vpop.xlane.xlu1 %345 }
  0xb9   : > { %v350_v30 = vpop.xlane.xlu2 %349  ;;  %v356_v31 = vadd.f32 %v342_v29, %v332_v26  ;;  %v358_v34 = vadd.f32 %v346_v33, %v334_v28 }
  0xba   : > { %v360_v32 = vadd.f32 %v350_v30, %v336_v27 }
  0xbb   : > { %365 = vst.msk [vmem:[#allocation2 + $0x8] sm:$0xff] %vm363_vm1, %v356_v31 }
  0xbc   : > { %369 = vst.msk [vmem:[#allocation2 + $0x28] sm:$0xff] %vm363_vm1, %v360_v32 }
  0xbd   : > { %367 = vst.msk [vmem:[#allocation2 + $0x18] sm:$0xff] %vm363_vm1, %v358_v34 }
  0xc0   : > { %v352_v38 = vpop.xlane.xlu0 %351  ;;  %v354_v41 = vpop.xlane.xlu1 %353 }
  0xc1   : > { %v389_v39 = vpop.xlane.xlu2 %388  ;;  %v361_v40 = vadd.f32 %v352_v38, %v337_v35  ;;  %v362_v43 = vadd.f32 %v354_v41, %v338_v37 }
  0xc2   : > { %v404_v42 = vadd.f32 %v389_v39, %v372_v36 }
  0xc3   : > { %370 = vst.msk [vmem:[#allocation2 + $0x30] sm:$0xff] %vm363_vm1, %v361_v40 }
  0xc4   : > { %371 = vst.msk [vmem:[#allocation2 + $0x38] sm:$0xff] %vm363_vm1, %v362_v43 }
  0xc5   : > { %412 = vst.msk [vmem:[#allocation3] sm:$0xff] %vm363_vm1, %v404_v42 }
  0xc8   : > { %v391_v47 = vpop.xlane.xlu0 %390  ;;  %v393_v50 = vpop.xlane.xlu1 %392 }
  0xc9   : > { %v395_v48 = vpop.xlane.xlu2 %394  ;;  %v405_v49 = vadd.f32 %v391_v47, %v373_v44  ;;  %v406_v52 = vadd.f32 %v393_v50, %v374_v46 }
  0xca   : > { %v407_v51 = vadd.f32 %v395_v48, %v375_v45 }
  0xcb   : > { %413 = vst.msk [vmem:[#allocation3 + $0x8] sm:$0xff] %vm363_vm1, %v405_v49 }
  0xcc   : > { %414 = vst.msk [vmem:[#allocation3 + $0x10] sm:$0xff] %vm363_vm1, %v406_v52 }
  0xcd   : > { %415 = vst.msk [vmem:[#allocation3 + $0x18] sm:$0xff] %vm363_vm1, %v407_v51 }
  0xd0   : > { %v397_v56 = vpop.xlane.xlu0 %396  ;;  %v399_v59 = vpop.xlane.xlu1 %398 }
  0xd1   : > { %v401_v57 = vpop.xlane.xlu2 %400  ;;  %v408_v58 = vadd.f32 %v397_v56, %v376_v53  ;;  %v409_v61 = vadd.f32 %v399_v59, %v377_v55 }
  0xd2   : > { %v410_v60 = vadd.f32 %v401_v57, %v378_v54 }
  0xd3   : > { %416 = vst.msk [vmem:[#allocation3 + $0x20] sm:$0xff] %vm363_vm1, %v408_v58 }
  0xd4   : > { %417 = vst.msk [vmem:[#allocation3 + $0x28] sm:$0xff] %vm363_vm1, %v409_v61 }
  0xd5   : > { %418 = vst.msk [vmem:[#allocation3 + $0x30] sm:$0xff] %vm363_vm1, %v410_v60 }
  0xd7   : > { %423 = sbr.rel (%p877_p2) target bundleno = 612 (0x264), region = 52 }
  0xd8   : > { %v403_v63 = vpop.xlane.xlu0 %402 }
  0xd9   : > { %v411_v0 = vadd.f32 %v403_v63, %v379_v62 }
  0xdb   : > { %419 = vst.msk [vmem:[#allocation3 + $0x38] sm:$0xff] %vm363_vm1, %v411_v0 }
  0xdc   : > { %v435_v1 = vld [vmem:[#allocation2 + $0x38] sm:$0xff]  ;;  %v434_v2 = vld [vmem:[#allocation2 + $0x30] sm:$0xff]  ;;  %v433_v5 = vld [vmem:[#allocation2 + $0x28] sm:$0xff]  ;;  %vm436_vm2 = vcmask 523264   ;;  %vm587_vm3 = vcmask 261120  }
  0xdd   : > { %457 = vmatpush.msra.mxu0 %v435_v1  ;;  %v484_v4 = vld [vmem:[#allocation3 + $0x30] sm:$0xff]  ;;  %v483_v6 = vld [vmem:[#allocation3 + $0x28] sm:$0xff]  ;;  %v432_v7 = vld [vmem:[#allocation2 + $0x20] sm:$0xff] }
  0xde   : > { %v482_v8 = vld [vmem:[#allocation3 + $0x20] sm:$0xff]  ;;  %v431_v9 = vld [vmem:[#allocation2 + $0x18] sm:$0xff]  ;;  %v430_v11 = vld [vmem:[#allocation2 + $0x10] sm:$0xff] }
  0xdf   : > { %458 = vmatpush.msra.mxu0 %v434_v2  ;;  %v481_v10 = vld [vmem:[#allocation3 + $0x18] sm:$0xff]  ;;  %v480_v12 = vld [vmem:[#allocation3 + $0x10] sm:$0xff]  ;;  %v429_v13 = vld [vmem:[#allocation2 + $0x8] sm:$0xff] }
  0xe0   : > { %v479_v14 = vld [vmem:[#allocation3 + $0x8] sm:$0xff]  ;;  %v428_v15 = vld [vmem:[#allocation2] sm:$0xff]  ;;  %v426_v19 = vld [vmem:[%s1441_s1 + $0x10] sm:$0xff] }
  0xe1   : > { %459 = vmatpush.msra.mxu0 %v433_v5  ;;  %v478_v16 = vld [vmem:[#allocation3] sm:$0xff]  ;;  %v425_v18 = vld [vmem:[%s1441_s1 + $0x8] sm:$0xff]  ;;  %v427_v20 = vld [vmem:[%s1441_s1 + $0x18] sm:$0xff] }
  0xe2   : > { %v485_v3 = vld [vmem:[#allocation3 + $0x38] sm:$0xff]  ;;  %v424_v17 = vld [vmem:[%s1441_s1] sm:$0xff]  ;;  %v580_v55 = vld [vmem:[%s1442_s2 + $0x8] sm:$0xff] }
  0xe3   : > { %494 = vmatpush.msra.mxu1 %v485_v3  ;;  %460 = vmatpush.msra.mxu0 %v432_v7  ;;  %v581_v0 = vld [vmem:[%s1442_s2 + $0x10] sm:$0xff] }
  0xe5   : > { %495 = vmatpush.msra.mxu1 %v484_v4  ;;  %461 = vmatpush.msra.mxu0 %v431_v9 }
  0xe7   : > { %496 = vmatpush.msra.mxu1 %v483_v6  ;;  %462 = vmatpush.msra.mxu0 %v430_v11  ;;  %v582_v11 = vld [vmem:[%s1442_s2 + $0x18] sm:$0xff] }
  0xe9   : > { %497 = vmatpush.msra.mxu1 %v482_v8  ;;  %463 = vmatpush.msra.mxu0 %v429_v13 }
  0xeb   : > { %498 = vmatpush.msra.mxu1 %v481_v10  ;;  %464 = vmatpush.msra.mxu0 %v428_v15 }
  0xec   : > { %878 = vmatmul.msk.f32.vlgmr.msra.gmra.mxu0 %vm436_vm2, %v424_v17 }
  0xed   : > { %499 = vmatpush.msra.mxu1 %v480_v12 }
  0xef   : > { %500 = vmatpush.msra.mxu1 %v479_v14 }
  0xf1   : > { %501 = vmatpush.msra.mxu1 %v478_v16 }
  0xf2   : > { %882 = vmatmul.msk.f32.vlgmr.msra.gmra.mxu1 %vm436_vm2, %v424_v17 }
  0xf4   : > { %879 = vmatmul.msk.f32.gmra.mxu0 %vm436_vm2, %v425_v18 }
  0xfa   : > { %883 = vmatmul.msk.f32.gmra.mxu1 %vm436_vm2, %v425_v18 }
  0xfc   : > { %880 = vmatmul.msk.f32.gmra.mxu0 %vm436_vm2, %v426_v19 }
 0x102   : > { %884 = vmatmul.msk.f32.gmra.mxu1 %vm436_vm2, %v426_v19  ;;  %v583_v19 = vld [vmem:[%s1442_s2 + $0x20] sm:$0xff] }
 0x104   : > { %881 = vmatmul.msk.f32.gmra.mxu0 %vm436_vm2, %v427_v20 }
 0x10a   : > { %885 = vmatmul.msk.f32.gmra.mxu1 %vm436_vm2, %v427_v20 }
 0x169   : > { %v466_v21 = vpop.f32.mrf.mxu0 }
 0x16a   : > { %v515_v23 = vmul.f32 0.001953125, %v466_v21  ;;  %v584_v21 = vld [vmem:[%s1442_s2 + $0x28] sm:$0xff] }
 0x16c   : > { %v523_v30 = vmul.f32 %v515_v23, %v515_v23 }
 0x16f   : > { %v503_v22 = vpop.f32.mrf.mxu1 }
 0x170   : > { %v519_v29 = vmul.f32 0.001953125, %v503_v22  ;;  %v585_v22 = vld [vmem:[%s1442_s2 + $0x30] sm:$0xff] }
 0x171   : > { %v469_v24 = vpop.f32.mrf.mxu0 }
 0x172   : > { %v516_v26 = vmul.f32 0.001953125, %v469_v24  ;;  %v527_v32 = vsub.f32 %v519_v29, %v523_v30  ;;  %v586_v24 = vld [vmem:[%s1442_s2 + $0x38] sm:$0xff]  ;;  %v719_v30 = vld [vmem:[%s1455_s18 + $0x8] sm:$0xff] }
 0x174   : > { %v524_v28 = vmul.f32 %v516_v26, %v516_v26  ;;  %v531_v39 = vmax.f32 %v527_v32, 0.0 }
 0x176   : > { %v1288_v43 = vadd.f32 1e-05, %v531_v39 }
 0x177   : > { %v506_v25 = vpop.f32.mrf.mxu1 }
 0x178   : > { %v520_v27 = vmul.f32 0.001953125, %v506_v25  ;;  %vm545_vm14 = vweird.f32 %v1288_v43 }
 0x179   : > { %v472_v33 = vpop.f32.mrf.mxu0 }
 0x17a   : > { %v528_v31 = vsub.f32 %v520_v27, %v524_v28  ;;  %v517_v35 = vmul.f32 0.001953125, %v472_v33  ;;  %v696_v33 = vld [vmem:[%s1443_s3 + $0x10] sm:$0xff] }
 0x17c   : > { %v532_v37 = vmax.f32 %v528_v31, 0.0  ;;  %v525_v38 = vmul.f32 %v517_v35, %v517_v35 }
 0x17e   : > { %v1286_v41 = vadd.f32 1e-05, %v532_v37  ;;  %v720_v37 = vld [vmem:[%s1455_s18 + $0x10] sm:$0xff] }
 0x17f   : > { %v509_v34 = vpop.f32.mrf.mxu1 }
 0x180   : > { %v521_v36 = vmul.f32 0.001953125, %v509_v34  ;;  %989 = vrsqrt.f32 %v1286_v41  ;;  %vm555_vm11 = vweird.f32 %v1286_v41 }
 0x181   : > { %v475_v44 = vpop.f32.mrf.mxu0 }
 0x182   : > { %v529_v40 = vsub.f32 %v521_v36, %v525_v38  ;;  %v518_v47 = vmul.f32 0.001953125, %v475_v44 }
 0x184   : > { %v533_v42 = vmax.f32 %v529_v40, 0.0  ;;  %v526_v49 = vmul.f32 %v518_v47, %v518_v47  ;;  %624 = vmatpush.msrb.mxu0 %v518_v47  ;;  %906 = vmatpush.msra.mxu2 %v518_v47  ;;  %v697_v40 = vld [vmem:[%s1443_s3 + $0x18] sm:$0xff] }
 0x186   : > { %v537_v46 = vadd.f32 1e-05, %v533_v42  ;;  %625 = vmatpush.msrb.mxu0 %v517_v35  ;;  %907 = vmatpush.msra.mxu2 %v517_v35  ;;  %v990_v52 = vpop.eup %989  ;;  %v694_v42 = vld [vmem:[%s1443_s3] sm:$0xff] }
 0x187   : > { %v512_v45 = vpop.f32.mrf.mxu1  ;;  %v550_v58 = vmul.f32 %v990_v52, %v1286_v41  ;;  %vm556_vm9 = vweird.f32 %v990_v52 }
 0x188   : > { %v522_v48 = vmul.f32 0.001953125, %v512_v45  ;;  %991 = vrsqrt.f32 %v537_v46  ;;  %626 = vmatpush.msrb.mxu0 %v516_v26  ;;  %908 = vmatpush.msra.mxu2 %v516_v26  ;;  %vm565_vm8 = vweird.f32 %v537_v46  ;;  %vm557_vm13 = vmor %vm555_vm11, %vm556_vm9  ;;  %v695_v26 = vld [vmem:[%s1443_s3 + $0x8] sm:$0xff] }
 0x189   : > { %993 = vrsqrt.f32 %v1288_v43  ;;  %v551_v61 = vmul.f32 %v990_v52, %v550_v58 }
 0x18a   : > { %v530_v50 = vsub.f32 %v522_v48, %v526_v49  ;;  %627 = vmatpush.msrb.mxu0 %v515_v23  ;;  %909 = vmatpush.msra.mxu2 %v515_v23  ;;  %v579_v23 = vld [vmem:[%s1442_s2] sm:$0xff] }
 0x18b   : > { %887 = vmatmul.msk.f32.vlgmr.msra.gmra.mxu2 %vm587_vm3, %v580_v55  ;;  %v552_v4 = vmul.f32 0.5, %v551_v61  ;;  %886 = vmatmul.msk.f32.vlgmr.msrb.gmra.mxu0 %vm587_vm3, %v579_v23  ;;  %v699_v61 = vld [vmem:[%s1443_s3 + $0x28] sm:$0xff] }
 0x18c   : > { %v534_v51 = vmax.f32 %v530_v50, 0.0  ;;  %v718_v50 = vld [vmem:[%s1455_s18] sm:$0xff] }
 0x18d   : > { %v553_v9 = vsub.f32 1.5, %v552_v4 }
 0x18e   : > { %v992_v53 = vpop.eup %991  ;;  %v538_v54 = vadd.f32 1e-05, %v534_v51 }
 0x18f   : > { %v994_v56 = vpop.eup %993  ;;  %v560_v57 = vmul.f32 %v992_v53, %v537_v46  ;;  %vm566_vm6 = vweird.f32 %v992_v53  ;;  %v554_v15 = vmul.f32 %v990_v52, %v553_v9  ;;  %v721_v46 = vld [vmem:[%s1455_s18 + $0x18] sm:$0xff] }
 0x190   : > { %995 = vrsqrt.f32 %v538_v54  ;;  %v540_v59 = vmul.f32 %v994_v56, %v1288_v43  ;;  %vm575_vm5 = vweird.f32 %v538_v54  ;;  %vm567_vm10 = vmor %vm565_vm8, %vm566_vm6  ;;  %vm546_vm12 = vweird.f32 %v994_v56 }
 0x191   : > { %v561_v60 = vmul.f32 %v992_v53, %v560_v57  ;;  %v558_v18 = vsel %vm557_vm13, %v990_v52, %v554_v15  ;;  %vm547_vm15 = vmor %vm545_vm14, %vm546_vm12  ;;  %v722_v57 = vld [vmem:[%s1455_s18 + $0x20] sm:$0xff] }
 0x192   : > { %v541_v63 = vmul.f32 %v994_v56, %v540_v59 }
 0x193   : > { %v562_v2 = vmul.f32 0.5, %v561_v60  ;;  %888 = vmatmul.msk.f32.gmra.mxu2 %vm587_vm3, %v581_v0 }
 0x194   : > { %v542_v5 = vmul.f32 0.5, %v541_v63 }
 0x195   : > { %v563_v7 = vsub.f32 1.5, %v562_v2 }
 0x196   : > { %v996_v62 = vpop.eup %995  ;;  %v543_v10 = vsub.f32 1.5, %v542_v5 }
 0x197   : > { %v570_v1 = vmul.f32 %v996_v62, %v538_v54  ;;  %vm576_vm4 = vweird.f32 %v996_v62  ;;  %v564_v13 = vmul.f32 %v992_v53, %v563_v7  ;;  %v698_v54 = vld [vmem:[%s1443_s3 + $0x20] sm:$0xff]  ;;  %v724_v7 = vld [vmem:[%s1455_s18 + $0x30] sm:$0xff] }
 0x198   : > { %vm577_vm7 = vmor %vm575_vm5, %vm576_vm4  ;;  %v544_v17 = vmul.f32 %v994_v56, %v543_v10  ;;  %v701_v10 = vld [vmem:[%s1443_s3 + $0x38] sm:$0xff] }
 0x199   : > { %v571_v3 = vmul.f32 %v996_v62, %v570_v1  ;;  %v568_v16 = vsel %vm567_vm10, %v992_v53, %v564_v13 }
 0x19a   : > { %v548_v20 = vsel %vm547_vm15, %v994_v56, %v544_v17 }
 0x19b   : > { %v572_v6 = vmul.f32 0.5, %v571_v3  ;;  %889 = vmatmul.msk.f32.gmra.mxu2 %vm587_vm3, %v582_v11  ;;  %v700_v3 = vld [vmem:[%s1443_s3 + $0x30] sm:$0xff] }
 0x19d   : > { %v573_v8 = vsub.f32 1.5, %v572_v6 }
 0x19f   : > { %v574_v12 = vmul.f32 %v996_v62, %v573_v8 }
 0x1a1   : > { %v578_v14 = vsel %vm577_vm7, %v996_v62, %v574_v12 }
 0x1a2   : > { %665 = vmatpush.msrb.mxu1 %v578_v14  ;;  %910 = vmatpush.msra.mxu3 %v578_v14  ;;  %v725_v14 = vld [vmem:[%s1455_s18 + $0x38] sm:$0xff] }
 0x1a3   : > { %890 = vmatmul.msk.f32.gmra.mxu2 %vm587_vm3, %v583_v19 }
 0x1a4   : > { %666 = vmatpush.msrb.mxu1 %v568_v16  ;;  %911 = vmatpush.msra.mxu3 %v568_v16 }
 0x1a6   : > { %667 = vmatpush.msrb.mxu1 %v558_v18  ;;  %912 = vmatpush.msra.mxu3 %v558_v18 }
 0x1a8   : > { %668 = vmatpush.msrb.mxu1 %v548_v20  ;;  %913 = vmatpush.msra.mxu3 %v548_v20 }
 0x1a9   : > { %895 = vmatmul.msk.f32.vlgmr.msra.gmra.mxu3 %vm587_vm3, %v580_v55  ;;  %894 = vmatmul.msk.f32.vlgmr.msrb.gmra.mxu1 %vm587_vm3, %v579_v23 }
 0x1ab   : > { %891 = vmatmul.msk.f32.gmra.mxu2 %vm587_vm3, %v584_v21 }
 0x1b1   : > { %896 = vmatmul.msk.f32.gmra.mxu3 %vm587_vm3, %v581_v0  ;;  %v723_v0 = vld [vmem:[%s1455_s18 + $0x28] sm:$0xff] }
 0x1b3   : > { %892 = vmatmul.msk.f32.gmra.mxu2 %vm587_vm3, %v585_v22 }
 0x1b9   : > { %897 = vmatmul.msk.f32.gmra.mxu3 %vm587_vm3, %v582_v11 }
 0x1bb   : > { %893 = vmatmul.msk.f32.gmra.mxu2 %vm587_vm3, %v586_v24 }
 0x1c1   : > { %898 = vmatmul.msk.f32.gmra.mxu3 %vm587_vm3, %v583_v19 }
 0x1c9   : > { %899 = vmatmul.msk.f32.gmra.mxu3 %vm587_vm3, %v584_v21 }
 0x1d1   : > { %900 = vmatmul.msk.f32.gmra.mxu3 %vm587_vm3, %v585_v22 }
 0x1d9   : > { %901 = vmatmul.msk.f32.gmra.mxu3 %vm587_vm3, %v586_v24 }
 0x208   : > { %v629_v48 = vpop.f32.mrf.mxu0 }
 0x20e   : > { %v632_v25 = vpop.f32.mrf.mxu2 }
 0x216   : > { %v635_v27 = vpop.f32.mrf.mxu2 }
 0x21e   : > { %v638_v35 = vpop.f32.mrf.mxu2 }
 0x226   : > { %v670_v41 = vpop.f32.mrf.mxu1  ;;  %v641_v47 = vpop.f32.mrf.mxu2 }
 0x227   : > { %v702_v44 = vmul.f32 %v694_v42, %v670_v41 }
 0x229   : > { %710 = vst.msk [vmem:[%s1225_s14] sm:$0xff] %vm363_vm1, %v702_v44  ;;  %v726_v51 = vmul.f32 %v702_v44, %v629_v48 }
 0x22b   : > { %v734_v53 = vsub.f32 %v718_v50, %v726_v51 }
 0x22c   : > { %v673_v28 = vpop.f32.mrf.mxu3 }
 0x22d   : > { %v703_v29 = vmul.f32 %v695_v26, %v673_v28  ;;  %742 = vst.msk [vmem:[%s1230_s21] sm:$0xff] %vm363_vm1, %v734_v53 }
 0x22e   : > { %v644_v59 = vpop.f32.mrf.mxu2 }
 0x22f   : > { %711 = vst.msk [vmem:[%s1225_s14 + $0x8] sm:$0xff] %vm363_vm1, %v703_v29  ;;  %v727_v31 = vmul.f32 %v703_v29, %v632_v25 }
 0x231   : > { %v735_v32 = vsub.f32 %v719_v30, %v727_v31 }
 0x233   : > { %743 = vst.msk [vmem:[%s1230_s21 + $0x8] sm:$0xff] %vm363_vm1, %v735_v32 }
 0x234   : > { %v676_v34 = vpop.f32.mrf.mxu3 }
 0x235   : > { %v704_v36 = vmul.f32 %v696_v33, %v676_v34 }
 0x236   : > { %v647_v4 = vpop.f32.mrf.mxu2 }
 0x237   : > { %712 = vst.msk [vmem:[%s1225_s14 + $0x10] sm:$0xff] %vm363_vm1, %v704_v36  ;;  %v728_v38 = vmul.f32 %v704_v36, %v635_v27 }
 0x239   : > { %v736_v39 = vsub.f32 %v720_v37, %v728_v38 }
 0x23b   : > { %744 = vst.msk [vmem:[%s1230_s21 + $0x10] sm:$0xff] %vm363_vm1, %v736_v39 }
 0x23c   : > { %v679_v43 = vpop.f32.mrf.mxu3 }
 0x23d   : > { %v705_v45 = vmul.f32 %v697_v40, %v679_v43 }
 0x23e   : > { %v650_v12 = vpop.f32.mrf.mxu2 }
 0x23f   : > { %713 = vst.msk [vmem:[%s1225_s14 + $0x18] sm:$0xff] %vm363_vm1, %v705_v45  ;;  %v729_v49 = vmul.f32 %v705_v45, %v638_v35 }
 0x241   : > { %v737_v52 = vsub.f32 %v721_v46, %v729_v49 }
 0x243   : > { %745 = vst.msk [vmem:[%s1230_s21 + $0x18] sm:$0xff] %vm363_vm1, %v737_v52 }
 0x244   : > { %v682_v55 = vpop.f32.mrf.mxu3 }
 0x245   : > { %v706_v56 = vmul.f32 %v698_v54, %v682_v55 }
 0x247   : > { %714 = vst.msk [vmem:[%s1225_s14 + $0x20] sm:$0xff] %vm363_vm1, %v706_v56  ;;  %v730_v58 = vmul.f32 %v706_v56, %v641_v47 }
 0x249   : > { %v738_v60 = vsub.f32 %v722_v57, %v730_v58 }
 0x24b   : > { %746 = vst.msk [vmem:[%s1230_s21 + $0x20] sm:$0xff] %vm363_vm1, %v738_v60 }
 0x24c   : > { %v685_v62 = vpop.f32.mrf.mxu3 }
 0x24d   : > { %v707_v63 = vmul.f32 %v699_v61, %v685_v62 }
 0x24f   : > { %715 = vst.msk [vmem:[%s1225_s14 + $0x28] sm:$0xff] %vm363_vm1, %v707_v63  ;;  %v731_v1 = vmul.f32 %v707_v63, %v644_v59 }
 0x251   : > { %v739_v2 = vsub.f32 %v723_v0, %v731_v1 }
 0x253   : > { %747 = vst.msk [vmem:[%s1230_s21 + $0x28] sm:$0xff] %vm363_vm1, %v739_v2 }
 0x254   : > { %v688_v5 = vpop.f32.mrf.mxu3 }
 0x255   : > { %v708_v6 = vmul.f32 %v700_v3, %v688_v5 }
 0x257   : > { %716 = vst.msk [vmem:[%s1225_s14 + $0x30] sm:$0xff] %vm363_vm1, %v708_v6  ;;  %v732_v8 = vmul.f32 %v708_v6, %v647_v4 }
 0x259   : > { %v740_v9 = vsub.f32 %v724_v7, %v732_v8 }
 0x25b   : > { %748 = vst.msk [vmem:[%s1230_s21 + $0x30] sm:$0xff] %vm363_vm1, %v740_v9 }
 0x25c   : > { %v691_v11 = vpop.f32.mrf.mxu3 }
 0x25d   : > { %v709_v13 = vmul.f32 %v701_v10, %v691_v11 }
 0x25f   : > { %717 = vst.msk [vmem:[%s1225_s14 + $0x38] sm:$0xff] %vm363_vm1, %v709_v13  ;;  %v733_v15 = vmul.f32 %v709_v13, %v650_v12 }
 0x261   : > { %v741_v16 = vsub.f32 %v725_v14, %v733_v15 }
 0x263   : > { %749 = vst.msk [vmem:[%s1230_s21 + $0x38] sm:$0xff] %vm363_vm1, %v741_v16 }
 0x264 PF: > { %s20_s28 = sadd.s32 1, %s1093_s28   ;;  %s1456_s13 = sld [smem:[#allocation7_spill]] }
 0x265   : > { %p17_p3 = scmp.ge.s32.totalorder %s20_s28, 6   ;;  %s1457_s15 = sld [smem:[#allocation8_spill]] }
 0x266   : > { %s1458_s21 = smov %s1069_s22  ;;  %s1459_s22 = smov %s1073_s23 }
 0x267   : > { %s1460_s23 = smov %s1201_s17  ;;  %s1461_s24 = smov %s1085_s26 }
 0x268   : > { %s1462_s25 = smov %s1089_s27  ;;  %19 = sbr.rel (!%p17_p3) target bundleno = 7 (0x7), region = 100 }
 0x26a   : > { %s1463_s26 = smov %s1456_s13 }
 0x26b   : > { %s1464_s27 = smov %s1457_s15 }
 0x26d   :  { %787 = vsyncpa [#allocation5], 1 }
 0x26e   :  { %789 = vsyncpa [#allocation5 + $0x1], 1 }

</bundles_post_ra>
